<compile_context>
chip_gen: v5e
topology: v5e:2x2
jax: 0.10.0
libtpu: 0.0.40
codegen_flags: <defaults>
</compile_context>

<pallas_src>
import jax
import jax.numpy as jnp
from jax.experimental import pallas as pl
from jax.experimental.pallas import tpu as pltpu


# --------------------------------------------------------------------------
# Kernels
# --------------------------------------------------------------------------
def _stats_kernel(x_ref, sum_ref, sumsq_ref):
    """Fused per-row sum / sum-of-squares, accumulated over the lane grid axis."""
    @pl.when(pl.program_id(1) == 0)
    def _():
        sum_ref[...] = jnp.zeros_like(sum_ref)
        sumsq_ref[...] = jnp.zeros_like(sumsq_ref)

    x = x_ref[...].astype(jnp.float32)                      # (RT, LT)
    sum_ref[...] += jnp.sum(x, axis=1, keepdims=True)       # (RT, 1)
    sumsq_ref[...] += jnp.sum(x * x, axis=1, keepdims=True)


def _normalize_kernel(x_ref, inv_scale_ref, bias_ref, z_ref):
    """z = (x - bias) * (1 / scale); per-row params broadcast over lanes."""
    x = x_ref[...].astype(jnp.float32)                      # (RT, LT)
    z_ref[...] = ((x - bias_ref[...]) * inv_scale_ref[...]).astype(z_ref.dtype)


# --------------------------------------------------------------------------
# Tiling helpers
# --------------------------------------------------------------------------
def _divisor_tile(dim, unit, max_tile):
    """Largest multiple-of-`unit` divisor of `dim` that is <= max_tile.

    Falls back to the full `dim` when it is not a multiple of `unit` (a
    full-extent block is always legal on TPU).
    """
    if dim % unit != 0:
        return dim
    best = unit
    cand = unit
    limit = min(dim, max_tile)
    while cand <= limit:
        if dim % cand == 0:
            best = cand
        cand += unit
    return best


_TARGET_TILE_BYTES = 2 * 1024 * 1024
_VMEM_LIMIT = 32 * 1024 * 1024   # comfortably inside every chip's VMEM


# --------------------------------------------------------------------------
# Forward wrapper (mirrors Actnorm.forward; returns updated params too)
# --------------------------------------------------------------------------
def actnorm_forward(x, scale, bias, initialized):
    """x: (N, C, H, W); scale/bias: (1, C, 1, 1).

    Returns (z, logdet, scale, bias) where scale/bias are the (possibly
    data-initialized) parameters, mirroring the in-place buffer update in
    the PyTorch module.
    """
    N, C, H, W = x.shape
    HW = H * W
    R, L = N * C, HW

    # Free view of the contiguous NCHW tensor: row r = (n, c) with c fastest,
    # lanes hold spatial positions.
    xp = x.reshape(R, L)

    itemsize = max(jnp.dtype(x.dtype).itemsize, 4)
    LT = _divisor_tile(L, 128, max(128, _TARGET_TILE_BYTES // (8 * itemsize)))
    RT = _divisor_tile(R, 8, max(8, _TARGET_TILE_BYTES // (LT * itemsize)))
    n_r, n_l = R // RT, L // LT

    x_spec = pl.BlockSpec((RT, LT), lambda r, l: (r, l))
    vec_spec = pl.BlockSpec((RT, 1), lambda r, l: (r, 0))

    if not initialized:
        # ---- Pass 1: fused per-row sum / sumsq, reduced over the lane axis.
        s, ss = pl.pallas_call(
            _stats_kernel,
            out_shape=(
                jax.ShapeDtypeStruct((R, 1), jnp.float32),
                jax.ShapeDtypeStruct((R, 1), jnp.float32),
            ),
            grid=(n_r, n_l),
            in_specs=[x_spec],
            out_specs=(vec_spec, vec_spec),
            compiler_params=pltpu.CompilerParams(
                dimension_semantics=("parallel", "arbitrary"),
                vmem_limit_bytes=_VMEM_LIMIT,
            ),
        )(xp)

        # Tiny finishing math on (C,)-sized arrays (combine the N batch rows).
        M = N * HW
        sum_c = s.reshape(N, C).sum(axis=0)
        sumsq_c = ss.reshape(N, C).sum(axis=0)
        mean_c = sum_c / M
        # E[x^2] - mean^2; matches torch std(1, unbiased=False) well within
        # the 1e-3 tolerance.
        var_c = jnp.maximum(sumsq_c / M - mean_c * mean_c, 0.0)
        scale_c = jnp.sqrt(var_c) + 1e-6
        bias_c = mean_c
        scale_out = scale_c.reshape(1, C, 1, 1).astype(scale.dtype)
        bias_out = bias_c.reshape(1, C, 1, 1).astype(bias.dtype)
    else:
        scale_c = scale.reshape(C).astype(jnp.float32)
        bias_c = bias.reshape(C).astype(jnp.float32)
        scale_out = scale
        bias_out = bias

    # Per-row params: row r = n*C + c  ->  param[r] = param_c[c].
    # Reciprocal hoisted here (C elements) so the kernel only multiplies.
    inv_r = jnp.tile(1.0 / scale_c, N).reshape(R, 1)
    bias_r = jnp.tile(bias_c, N).reshape(R, 1)

    # ---- Pass 2: elementwise normalize; tiles independent -> megacore parallel.
    zp = pl.pallas_call(
        _normalize_kernel,
        out_shape=jax.ShapeDtypeStruct((R, L), x.dtype),
        grid=(n_r, n_l),
        in_specs=[x_spec, vec_spec, vec_spec],
        out_specs=x_spec,
        compiler_params=pltpu.CompilerParams(
            dimension_semantics=("parallel", "parallel"),
            vmem_limit_bytes=_VMEM_LIMIT,
        ),
    )(xp, inv_r, bias_r)

    z = zp.reshape(N, C, H, W)   # free reshape back to NCHW

    # logdet on the tiny per-channel scale vector, in plain JAX (hoisted).
    logdet = -jnp.sum(jnp.log(jnp.abs(scale_c))) * float(H * W)
    return z, logdet, scale_out, bias_out


# --------------------------------------------------------------------------
# Pure-JAX reference of the PyTorch first-call forward.
# --------------------------------------------------------------------------
def _actnorm_ref(x):
    C = x.shape[1]
    flat = jnp.transpose(x, (1, 0, 2, 3)).reshape(C, -1)
    mean = flat.mean(axis=1)
    std = flat.std(axis=1)                                  # ddof=0 == std(1, False)
    scale = std + 1e-6
    z = (x - mean.reshape(1, C, 1, 1)) / scale.reshape(1, C, 1, 1)
    logdet = -jnp.sum(jnp.log(jnp.abs(scale))) * x.shape[2] * x.shape[3]
    return z, logdet


if __name__ == "__main__":
    key = jax.random.PRNGKey(0)
    N, C, H, W = 2, 4, 16, 16
    x = jax.random.normal(key, (N, C, H, W), dtype=jnp.float32)

    # Deterministic parameter init per the module's __init__ (param_dim=(1,C,1,1)).
    scale0 = jnp.ones((1, C, 1, 1), jnp.float32)
    bias0 = jnp.zeros((1, C, 1, 1), jnp.float32)

    # First call: data-dependent init path (initialized == False).
    z, logdet, scale1, bias1 = actnorm_forward(x, scale0, bias0, initialized=False)
    jax.block_until_ready((z, logdet, scale1, bias1))

    # Second call: initialized path, re-using the data-initialized params.
    z2, logdet2, _, _ = actnorm_forward(x, scale1, bias1, initialized=True)
    jax.block_until_ready((z2, logdet2))

    # Sanity check against the pure-JAX reference.
    z_ref, logdet_ref = _actnorm_ref(x)
    assert jnp.allclose(z, z_ref, rtol=1e-3, atol=1e-3)
    assert jnp.allclose(z2, z_ref, rtol=1e-3, atol=1e-3)
    assert jnp.allclose(logdet, logdet_ref, rtol=1e-3, atol=1e-3)
    assert jnp.allclose(logdet2, logdet_ref, rtol=1e-3, atol=1e-3)

    print("KERNEL_OK")
</pallas_src>

<mosaic_0001>
module attributes {stable_mosaic.version = 11 : i64} {
  func.func @_stats_kernel(%arg0: i32, %arg1: i32, %arg2: memref<8x256xf32, #tpu.memory_space<vmem>>, %arg3: memref<8x1xf32, #tpu.memory_space<vmem>>, %arg4: memref<8x1xf32, #tpu.memory_space<vmem>>) attributes {dimension_semantics = [#tpu.dimension_semantics<parallel>, #tpu.dimension_semantics<arbitrary>], iteration_bounds = array<i64: 1, 1>, scalar_prefetch = 0 : i64, scratch_operands = 0 : i64, tpu.core_type = #tpu.core_type<tc>, window_params = [{transform_indices = @transform_0, window_bounds = array<i64: 8, 256>}, {transform_indices = @transform_1, window_bounds = array<i64: 8, 1>}, {transform_indices = @transform_2, window_bounds = array<i64: 8, 1>}]} {
    %c0_i32 = arith.constant 0 : i32
    %0 = arith.cmpi eq, %arg1, %c0_i32 : i32
    %1 = arith.extui %0 : i1 to i32
    %c0_i32_0 = arith.constant 0 : i32
    %2 = arith.cmpi ne, %1, %c0_i32_0 : i32
    scf.if %2 {
      %cst_11 = arith.constant 0.000000e+00 : f32
      %15 = vector.broadcast %cst_11 : f32 to vector<8x1xf32>
      %c0_12 = arith.constant 0 : index
      %c0_13 = arith.constant 0 : index
      %16 = vector.load %arg3[%c0_12, %c0_13] : memref<8x1xf32, #tpu.memory_space<vmem>>, vector<8x1xf32>
      tpu.vector_store %arg3[%c0_12, %c0_13], %15 {strides = array<i32>} : memref<8x1xf32, #tpu.memory_space<vmem>>, vector<8x1xf32>,
      %cst_14 = arith.constant 0.000000e+00 : f32
      %17 = vector.broadcast %cst_14 : f32 to vector<8x1xf32>
      %c0_15 = arith.constant 0 : index
      %c0_16 = arith.constant 0 : index
      %18 = vector.load %arg4[%c0_15, %c0_16] : memref<8x1xf32, #tpu.memory_space<vmem>>, vector<8x1xf32>
      tpu.vector_store %arg4[%c0_15, %c0_16], %17 {strides = array<i32>} : memref<8x1xf32, #tpu.memory_space<vmem>>, vector<8x1xf32>,
    } else {
    }
    %c0 = arith.constant 0 : index
    %c0_1 = arith.constant 0 : index
    %3 = vector.load %arg2[%c0, %c0_1] : memref<8x256xf32, #tpu.memory_space<vmem>>, vector<8x256xf32>
    %c0_2 = arith.constant 0 : index
    %c0_3 = arith.constant 0 : index
    %4 = vector.load %arg3[%c0_2, %c0_3] : memref<8x1xf32, #tpu.memory_space<vmem>>, vector<8x1xf32>
    %cst = arith.constant dense<0.000000e+00> : vector<8xf32>
    %5 = vector.multi_reduction <add>, %3, %cst [1] : vector<8x256xf32> to vector<8xf32>
    %6 = vector.shape_cast %5 : vector<8xf32> to vector<8x1xf32>
    %7 = arith.addf %4, %6 : vector<8x1xf32>
    %c0_4 = arith.constant 0 : index
    %c0_5 = arith.constant 0 : index
    %8 = vector.load %arg3[%c0_4, %c0_5] : memref<8x1xf32, #tpu.memory_space<vmem>>, vector<8x1xf32>
    tpu.vector_store %arg3[%c0_4, %c0_5], %7 {strides = array<i32>} : memref<8x1xf32, #tpu.memory_space<vmem>>, vector<8x1xf32>,
    %c0_6 = arith.constant 0 : index
    %c0_7 = arith.constant 0 : index
    %9 = vector.load %arg4[%c0_6, %c0_7] : memref<8x1xf32, #tpu.memory_space<vmem>>, vector<8x1xf32>
    %10 = arith.mulf %3, %3 : vector<8x256xf32>
    %cst_8 = arith.constant dense<0.000000e+00> : vector<8xf32>
    %11 = vector.multi_reduction <add>, %10, %cst_8 [1] : vector<8x256xf32> to vector<8xf32>
    %12 = vector.shape_cast %11 : vector<8xf32> to vector<8x1xf32>
    %13 = arith.addf %9, %12 : vector<8x1xf32>
    %c0_9 = arith.constant 0 : index
    %c0_10 = arith.constant 0 : index
    %14 = vector.load %arg4[%c0_9, %c0_10] : memref<8x1xf32, #tpu.memory_space<vmem>>, vector<8x1xf32>
    tpu.vector_store %arg4[%c0_9, %c0_10], %13 {strides = array<i32>} : memref<8x1xf32, #tpu.memory_space<vmem>>, vector<8x1xf32>,
    return
  }
  func.func @transform_0(%arg0: i32, %arg1: i32) -> (i32, i32) {
    %c0_i32 = arith.constant 0 : i32
    return %arg0, %arg1 : i32, i32
  }
  func.func @transform_1(%arg0: i32, %arg1: i32) -> (i32, i32) {
    %c0_i32 = arith.constant 0 : i32
    %c0_i32_0 = arith.constant 0 : i32
    return %arg0, %c0_i32 : i32, i32
  }
  func.func @transform_2(%arg0: i32, %arg1: i32) -> (i32, i32) {
    %c0_i32 = arith.constant 0 : i32
    %c0_i32_0 = arith.constant 0 : i32
    return %arg0, %c0_i32 : i32, i32
  }
}

</mosaic_0001>

<bundles_post_ra>
// kernel: tpu_custom_call.1
= control target key start
LH: loop header
LB: loop body
LE: loop exit
PB: predicated region body
PF: predicated region fallthrough
CT: control target
= control target key end

     0   :  { %8 = vsyncpa [#allocation3], 0  ;;  %s85_s12 = smov [#allocation2]   ;;  %s127_s0 = inlined_call_operand.hbm [shape: f32[8,256], index: 0, kind: input, shape index: {}]   ;;  %s128_s1 = inlined_call_operand.vmem [shape: f32[8,1], index: 1, kind: output, shape index: {0}]   ;;  %s129_s2 = inlined_call_operand.vmem [shape: f32[8,1], index: 2, kind: output, shape index: {1}]  }
   0x1   :  { %s14_s11 = sshll.u32 %s127_s0, 4  ;;  %s16_s13 = sshll.u32 %s85_s12, 4  ;;  %s15_s11 = int_to_ptr.hbm [resolvable:$true] %s14_s11  ;;  %s17_s13 = int_to_ptr.vmem [resolvable:$true] %s16_s13 }
   0x2   :  { %19 = dma.hbm_to_vmem [thread:$0]  %s15_s11, 256, %s17_s13, [#allocation3]  }
   0x3   :  { %83 = dma.done.wait [#allocation3], 256  }
   0x4   :  { %84 = vsyncadd [#allocation3], 4294967040  ;;  %vm28_vm0 = vcmask 7168   ;;  %v86_v0 = vmov 0.0   ;;  %v31_v1 = vld [vmem:[#allocation2] sm:$0xff]  ;;  %v32_v2 = vld [vmem:[#allocation2 + $0x8] sm:$0xff] }
   0x5   :  { %29 = vst.msk [vmem:[%s128_s1] sm:$0xff] %vm28_vm0, %v86_v0  ;;  %v34_v3 = vadd.f32 %v32_v2, %v31_v1  ;;  %v41_v4 = vmul.f32 %v31_v1, %v31_v1  ;;  %v42_v5 = vmul.f32 %v32_v2, %v32_v2 }
   0x6   :  { %30 = vst.msk [vmem:[%s129_s2] sm:$0xff] %vm28_vm0, %v86_v0 }
   0x7   :  { %35 = vadd.xlane.f32.xlu0 %v34_v3  ;;  %v43_v6 = vadd.f32 %v42_v5, %v41_v4 }
   0xc   :  { %v33_v7 = vld [vmem:[%s128_s1] sm:$0xff] }
   0xd   :  { %v40_v10 = vld [vmem:[%s129_s2] sm:$0xff] }
   0xf   :  { %44 = vadd.xlane.f32.xlu0 %v43_v6 }
  0x7a   :  { %v36_v8 = vpop.xlane.xlu0 %35 }
  0x7b   :  { %v37_v9 = vadd.f32 %v36_v8, %v33_v7 }
  0x7d   :  { %39 = vst.msk [vmem:[%s128_s1] sm:$0xff] %vm28_vm0, %v37_v9 }
  0x82   :  { %v45_v11 = vpop.xlane.xlu0 %44 }
  0x83   :  { %v46_v12 = vadd.f32 %v45_v11, %v40_v10 }
  0x85   :  { %47 = vst.msk [vmem:[%s129_s2] sm:$0xff] %vm28_vm0, %v46_v12 }
  0x86   :  { %56 = vsyncpa [#allocation3], 1 }

</bundles_post_ra>
